<compile_context>
chip_gen: v7x
topology: tpu7x:2x2x1
jax: 0.10.0
libtpu: 0.0.40
codegen_flags: <defaults>
</compile_context>

<pallas_src>
import functools

import jax
import jax.numpy as jnp
from jax.experimental import pallas as pl
from jax.experimental.pallas import tpu as pltpu


# ----------------------------------------------------------------------------
# VMEM budgeting helpers
# ----------------------------------------------------------------------------

def _sublane_multiple(itemsize):
    # bf16 packs 2 rows / sublane, int8/fp8 pack 4 -> require fuller packing.
    return {4: 8, 2: 16, 1: 32}.get(itemsize, 8)


def _vmem_budget_and_limit():
    """Generation-aware per-step block budget and scoped-VMEM limit."""
    try:
        cap = int(pltpu.get_tpu_info().vmem_capacity_bytes)
    except Exception:
        cap = 64 << 20  # conservative (v7x-sized) fallback
    # v5e/v6e (128 MiB physical): ~64 MiB block budget; v7x (64 MiB): ~48 MiB.
    budget = min(cap * 3 // 4, 64 << 20)
    limit = min(cap - (4 << 20), budget + (16 << 20))
    return budget, limit


def _block_footprint(n_rows, d_chan, lanes, in_itemsize, out_itemsize):
    """VMEM bytes for one grid step: double-buffered in+out blocks plus the
    in-kernel f32 working set (upcast copy / squared-product temporaries)."""
    elems = n_rows * d_chan * lanes
    io = 2 * elems * (in_itemsize + out_itemsize)          # double-buffered I/O
    f32_copies = 1 if in_itemsize == 4 else 2               # upcast + product
    work = f32_copies * elems * 4
    params = 8 * d_chan * 4                                 # gamma/beta/scale/bias
    return io + work + params


def _pick_channel_block(cs, n, tf, in_itemsize, out_itemsize, sub, budget):
    divisors = [d for d in range(1, cs + 1) if cs % d == 0]
    # Sublane rule (dtype-aware packing): bc multiple of `sub`, or the full axis.
    friendly = [d for d in divisors if d % sub == 0 or d == cs]
    feasible = [d for d in friendly
                if _block_footprint(n, d, tf, in_itemsize, out_itemsize) <= budget]
    if not feasible:
        return None  # one channel's whole (N, T*Fs) slab is too big -> two-pass
    bc = max(feasible)
    if bc == cs:
        # Prefer >=2 grid steps so megacore / v7x dual-TC can shard "parallel".
        smaller = [d for d in feasible if d < cs]
        if smaller:
            bc = max(smaller)
    return bc


def _pick_split(n, tf, bc, in_itemsize, out_itemsize, budget):
    """Fallback tile (bn, tl) for the split-reduction path; lane dim kept a
    multiple of 128 (or the full axis) for unmasked stores."""
    tl_opts = [d for d in range(1, tf + 1)
               if tf % d == 0 and (d % 128 == 0 or d == tf)]
    bn_opts = [d for d in range(1, n + 1) if n % d == 0]
    best = None
    for bn in bn_opts:
        for tl in tl_opts:
            if _block_footprint(bn, bc, tl, in_itemsize, out_itemsize) <= budget:
                if best is None or bn * tl > best[0] * best[1]:
                    best = (bn, tl)
    if best is None:
        # TODO(synk): even the smallest tile overflows the budget; fall back to
        # the smallest lane-friendly tile and rely on vmem_limit_bytes headroom.
        best = (1, min(tl_opts))
    return best


# ----------------------------------------------------------------------------
# Kernels
# ----------------------------------------------------------------------------

def _ssn_fused_kernel(gamma_ref, beta_ref, x_ref, o_ref, *, eps, low_prec):
    """Single-pass-per-block SSN: stats traversal + apply traversal in VMEM."""
    xf = x_ref[...].astype(jnp.float32)            # (N, BC, TF)
    n_rows, _, lanes = xf.shape
    inv_count = 1.0 / float(n_rows * lanes)

    # One-pass stats: batch-axis reduce first (VALU vreg adds), then a single
    # cross-lane (XLU) reduce per channel for sum and sum-of-squares.
    s1 = jnp.sum(xf, axis=0)                       # (BC, TF)
    s2 = jnp.sum(xf * xf, axis=0)                  # (BC, TF)
    ssum = jnp.sum(s1, axis=-1, keepdims=True)     # (BC, 1)
    qsum = jnp.sum(s2, axis=-1, keepdims=True)     # (BC, 1)

    mean = ssum * inv_count                        # (BC, 1)
    var = jnp.maximum(qsum * inv_count - mean * mean, 0.0)   # biased, clamped
    inv = jax.lax.rsqrt(var + eps)

    gamma = gamma_ref[...].astype(jnp.float32)     # (1, BC, 1)
    beta = beta_ref[...].astype(jnp.float32)
    scale = inv[None] * gamma                      # (1, BC, 1)
    bias = beta - mean[None] * scale               # (1, BC, 1)

    # Apply pass: second traversal of the resident VMEM block, one FMA/element.
    if low_prec:
        # bf16 input: FMA stays in bf16 (bf16 VPU on v6e/v7x); stats were f32.
        o_ref[...] = (x_ref[...] * scale.astype(o_ref.dtype)
                      + bias.astype(o_ref.dtype)).astype(o_ref.dtype)
    else:
        o_ref[...] = (x_ref[...].astype(jnp.float32) * scale
                      + bias).astype(o_ref.dtype)


def _ssn_stats_kernel(gamma_ref, beta_ref, x_ref, scale_ref, bias_ref,
                      s_acc, q_acc, *, eps, inv_count):
    """Split-reduction stats: accumulate (sum, sumsq) over trailing grid axes,
    emit folded per-channel (scale, bias) at the last reduction step."""
    i = pl.program_id(1)
    j = pl.program_id(2)

    @pl.when(jnp.logical_and(i == 0, j == 0))
    def _():
        s_acc[...] = jnp.zeros_like(s_acc)
        q_acc[...] = jnp.zeros_like(q_acc)

    xf = x_ref[...].astype(jnp.float32)            # (bn, bc, tl)
    s1 = jnp.sum(xf, axis=0)                       # (bc, tl)   VALU
    s2 = jnp.sum(xf * xf, axis=0)                  # (bc, tl)   VALU
    s_acc[...] += jnp.sum(s1, axis=-1, keepdims=True)[None]   # (1, bc, 1) XLU
    q_acc[...] += jnp.sum(s2, axis=-1, keepdims=True)[None]

    last = jnp.logical_and(i == pl.num_programs(1) - 1,
                           j == pl.num_programs(2) - 1)

    @pl.when(last)
    def _():
        mean = s_acc[...] * inv_count
        var = jnp.maximum(q_acc[...] * inv_count - mean * mean, 0.0)
        inv = jax.lax.rsqrt(var + eps)
        scale = inv * gamma_ref[...].astype(jnp.float32)
        scale_ref[...] = scale
        bias_ref[...] = beta_ref[...].astype(jnp.float32) - mean * scale


def _ssn_apply_kernel(scale_ref, bias_ref, x_ref, o_ref, *, low_prec):
    scale = scale_ref[...]                         # (1, bc, 1) f32
    bias = bias_ref[...]
    if low_prec:
        o_ref[...] = (x_ref[...] * scale.astype(o_ref.dtype)
                      + bias.astype(o_ref.dtype)).astype(o_ref.dtype)
    else:
        o_ref[...] = (x_ref[...].astype(jnp.float32) * scale
                      + bias).astype(o_ref.dtype)


# ----------------------------------------------------------------------------
# Wrapper
# ----------------------------------------------------------------------------

def sub_spectral_norm(x, gamma, beta, S, eps=1e-5, *,
                      force_two_pass=False, force_split=None):
    """SubSpectralNorm forward: x (N, C, T, F) -> (N, C, T, F)."""
    N, C, T, F = x.shape
    assert F % S == 0
    Fs = F // S
    CS = C * S
    TF = T * Fs
    assert gamma.shape == (CS,) and beta.shape == (CS,)

    # Contiguous, layout-preserving fold: (N, C, T, F) -> (N, CS, T*Fs).
    # Identical flat reinterpretation as the PyTorch reshape to (N, CS, T, Fs);
    # BN stats over (N, T, Fs) == stats over (N, T*Fs).
    xr = x.reshape(N, CS, TF)
    # TODO(synk): if T*(F//S) is not a multiple of 128, stores are lane-masked;
    # a stats-aware pad/fold would be needed to recover full-width stores.

    in_isz = jnp.dtype(x.dtype).itemsize
    out_isz = in_isz
    sub = _sublane_multiple(in_isz)
    budget, vmem_limit = _vmem_budget_and_limit()
    low_prec = (x.dtype == jnp.bfloat16)

    gamma3 = gamma.reshape(1, CS, 1).astype(jnp.float32)
    beta3 = beta.reshape(1, CS, 1).astype(jnp.float32)

    bc = _pick_channel_block(CS, N, TF, in_isz, out_isz, sub, budget)

    # ---------------- Main path: fused single-call kernel --------------------
    if bc is not None and not force_two_pass:
        kernel = functools.partial(_ssn_fused_kernel, eps=float(eps),
                                   low_prec=low_prec)
        out = pl.pallas_call(
            kernel,
            out_shape=jax.ShapeDtypeStruct((N, CS, TF), x.dtype),
            grid_spec=pltpu.PrefetchScalarGridSpec(
                num_scalar_prefetch=0,
                grid=(CS // bc,),
                in_specs=[
                    # gamma/beta: tiny per-step blocks, hidden by the pipeline.
                    pl.BlockSpec((1, bc, 1), lambda c: (0, c, 0)),
                    pl.BlockSpec((1, bc, 1), lambda c: (0, c, 0)),
                    # x: bc channels per step, full (N, T*Fs) slab, lane-dense.
                    pl.BlockSpec((N, bc, TF), lambda c: (0, c, 0)),
                ],
                out_specs=pl.BlockSpec((N, bc, TF), lambda c: (0, c, 0)),
            ),
            compiler_params=pltpu.CompilerParams(
                dimension_semantics=("parallel",),
                vmem_limit_bytes=vmem_limit,
            ),
        )(gamma3, beta3, xr)
        return out.reshape(N, C, T, F)

    # --------------- Fallback: two-pass split-reduction ----------------------
    if bc is None:
        friendly = [d for d in range(1, CS + 1)
                    if CS % d == 0 and (d % sub == 0 or d == CS)]
        bc = min(friendly)
    if force_split is not None:
        bn, tl = force_split
    else:
        bn, tl = _pick_split(N, TF, bc, in_isz, out_isz, budget)

    inv_count = 1.0 / float(N * TF)
    stats_kernel = functools.partial(_ssn_stats_kernel, eps=float(eps),
                                     inv_count=inv_count)
    scale, bias = pl.pallas_call(
        stats_kernel,
        out_shape=(jax.ShapeDtypeStruct((1, CS, 1), jnp.float32),
                   jax.ShapeDtypeStruct((1, CS, 1), jnp.float32)),
        grid_spec=pltpu.PrefetchScalarGridSpec(
            num_scalar_prefetch=0,
            grid=(CS // bc, N // bn, TF // tl),
            in_specs=[
                pl.BlockSpec((1, bc, 1), lambda c, i, j: (0, c, 0)),
                pl.BlockSpec((1, bc, 1), lambda c, i, j: (0, c, 0)),
                pl.BlockSpec((bn, bc, tl), lambda c, i, j: (i, c, j)),
            ],
            out_specs=[
                pl.BlockSpec((1, bc, 1), lambda c, i, j: (0, c, 0)),
                pl.BlockSpec((1, bc, 1), lambda c, i, j: (0, c, 0)),
            ],
            scratch_shapes=[pltpu.VMEM((1, bc, 1), jnp.float32),
                            pltpu.VMEM((1, bc, 1), jnp.float32)],
        ),
        compiler_params=pltpu.CompilerParams(
            dimension_semantics=("parallel", "arbitrary", "arbitrary"),
            vmem_limit_bytes=vmem_limit,
        ),
    )(gamma3, beta3, xr)

    apply_kernel = functools.partial(_ssn_apply_kernel, low_prec=low_prec)
    out = pl.pallas_call(
        apply_kernel,
        out_shape=jax.ShapeDtypeStruct((N, CS, TF), x.dtype),
        grid_spec=pltpu.PrefetchScalarGridSpec(
            num_scalar_prefetch=0,
            grid=(CS // bc, N // bn, TF // tl),
            in_specs=[
                pl.BlockSpec((1, bc, 1), lambda c, i, j: (0, c, 0)),
                pl.BlockSpec((1, bc, 1), lambda c, i, j: (0, c, 0)),
                pl.BlockSpec((bn, bc, tl), lambda c, i, j: (i, c, j)),
            ],
            out_specs=pl.BlockSpec((bn, bc, tl), lambda c, i, j: (i, c, j)),
        ),
        compiler_params=pltpu.CompilerParams(
            dimension_semantics=("parallel", "parallel", "parallel"),
            vmem_limit_bytes=vmem_limit,
        ),
    )(scale, bias, xr)
    return out.reshape(N, C, T, F)


# ----------------------------------------------------------------------------
# Reference + self-test
# ----------------------------------------------------------------------------

def _reference(x, gamma, beta, S, eps=1e-5):
    N, C, T, F = x.shape
    Fs = F // S
    xr = x.reshape(N, C * S, T, Fs).astype(jnp.float32)
    mean = jnp.mean(xr, axis=(0, 2, 3), keepdims=True)
    var = jnp.mean(jnp.square(xr - mean), axis=(0, 2, 3), keepdims=True)
    out = (xr - mean) / jnp.sqrt(var + eps)
    out = out * gamma[None, :, None, None] + beta[None, :, None, None]
    return out.reshape(N, C, T, F).astype(x.dtype)


if __name__ == "__main__":
    # Module config: C=4 channels, S=2 sub-bands -> BatchNorm2d over C*S = 8.
    N, C, T, F = 2, 4, 16, 16
    S = 2
    CS = C * S

    key = jax.random.PRNGKey(0)
    x = jax.random.normal(key, (N, C, T, F), dtype=jnp.float32)

    # Deterministic affine params (default BN init is ones/zeros; vary slightly
    # so the affine path is exercised).
    gamma = 1.0 + 0.1 * jnp.arange(CS, dtype=jnp.float32)
    beta = 0.01 * jnp.arange(CS, dtype=jnp.float32)

    ref = _reference(x, gamma, beta, S)

    # Main (fused single-call) path.
    out = sub_spectral_norm(x, gamma, beta, S)
    out = jax.block_until_ready(out)
    assert out.shape == (N, C, T, F)
    assert jnp.max(jnp.abs(out - ref)) < 1e-4, "fused-path mismatch vs reference"

    # Two-pass split-reduction fallback (forced, split over the batch axis) to
    # validate the big-slab path's accumulator logic.
    out2 = sub_spectral_norm(x, gamma, beta, S,
                             force_two_pass=True, force_split=(1, T * (F // S)))
    out2 = jax.block_until_ready(out2)
    assert jnp.max(jnp.abs(out2 - ref)) < 1e-4, "two-pass-path mismatch vs reference"

    print("KERNEL_OK")
</pallas_src>

<mosaic_0001>
module attributes {stable_mosaic.version = 11 : i64} {
  func.func @_ssn_fused_kernel(%arg0: i32, %arg1: memref<1x8x1xf32, #tpu.memory_space<vmem>>, %arg2: memref<1x8x1xf32, #tpu.memory_space<vmem>>, %arg3: memref<2x8x128xf32, #tpu.memory_space<vmem>>, %arg4: memref<2x8x128xf32, #tpu.memory_space<vmem>>) attributes {dimension_semantics = [#tpu.dimension_semantics<parallel>], iteration_bounds = array<i64: 1>, scalar_prefetch = 0 : i64, scratch_operands = 0 : i64, tpu.core_type = #tpu.core_type<tc>, window_params = [{transform_indices = @transform_0, window_bounds = array<i64: 1, 8, 1>}, {transform_indices = @transform_1, window_bounds = array<i64: 1, 8, 1>}, {transform_indices = @transform_2, window_bounds = array<i64: 2, 8, 128>}, {transform_indices = @transform_3, window_bounds = array<i64: 2, 8, 128>}]} {
    %c0 = arith.constant 0 : index
    %c0_0 = arith.constant 0 : index
    %c0_1 = arith.constant 0 : index
    %0 = vector.load %arg3[%c0, %c0_0, %c0_1] : memref<2x8x128xf32, #tpu.memory_space<vmem>>, vector<2x8x128xf32>
    %cst = arith.constant dense<0.000000e+00> : vector<8x128xf32>
    %1 = vector.multi_reduction <add>, %0, %cst [0] : vector<2x8x128xf32> to vector<8x128xf32>
    %2 = arith.mulf %0, %0 : vector<2x8x128xf32>
    %cst_2 = arith.constant dense<0.000000e+00> : vector<8x128xf32>
    %3 = vector.multi_reduction <add>, %2, %cst_2 [0] : vector<2x8x128xf32> to vector<8x128xf32>
    %cst_3 = arith.constant dense<0.000000e+00> : vector<8xf32>
    %4 = vector.multi_reduction <add>, %1, %cst_3 [1] : vector<8x128xf32> to vector<8xf32>
    %5 = vector.shape_cast %4 : vector<8xf32> to vector<8x1xf32>
    %cst_4 = arith.constant dense<0.000000e+00> : vector<8xf32>
    %6 = vector.multi_reduction <add>, %3, %cst_4 [1] : vector<8x128xf32> to vector<8xf32>
    %7 = vector.shape_cast %6 : vector<8xf32> to vector<8x1xf32>
    %cst_5 = arith.constant 3.906250e-03 : f32
    %8 = vector.broadcast %cst_5 : f32 to vector<8x1xf32>
    %9 = arith.mulf %5, %8 : vector<8x1xf32>
    %cst_6 = arith.constant 3.906250e-03 : f32
    %10 = vector.broadcast %cst_6 : f32 to vector<8x1xf32>
    %11 = arith.mulf %7, %10 : vector<8x1xf32>
    %12 = arith.mulf %9, %9 : vector<8x1xf32>
    %13 = arith.subf %11, %12 : vector<8x1xf32>
    %cst_7 = arith.constant 0.000000e+00 : f32
    %14 = vector.broadcast %cst_7 : f32 to vector<8x1xf32>
    %15 = arith.maximumf %13, %14 : vector<8x1xf32>
    %cst_8 = arith.constant 9.99999974E-6 : f32
    %16 = vector.broadcast %cst_8 : f32 to vector<8x1xf32>
    %17 = arith.addf %15, %16 : vector<8x1xf32>
    %18 = math.rsqrt %17 : vector<8x1xf32>
    %c0_9 = arith.constant 0 : index
    %c0_10 = arith.constant 0 : index
    %c0_11 = arith.constant 0 : index
    %19 = vector.load %arg1[%c0_9, %c0_10, %c0_11] : memref<1x8x1xf32, #tpu.memory_space<vmem>>, vector<1x8x1xf32>
    %c0_12 = arith.constant 0 : index
    %c0_13 = arith.constant 0 : index
    %c0_14 = arith.constant 0 : index
    %20 = vector.load %arg2[%c0_12, %c0_13, %c0_14] : memref<1x8x1xf32, #tpu.memory_space<vmem>>, vector<1x8x1xf32>
    %21 = vector.shape_cast %18 : vector<8x1xf32> to vector<1x8x1xf32>
    %22 = arith.mulf %21, %19 : vector<1x8x1xf32>
    %23 = vector.shape_cast %9 : vector<8x1xf32> to vector<1x8x1xf32>
    %24 = arith.mulf %23, %22 : vector<1x8x1xf32>
    %25 = arith.subf %20, %24 : vector<1x8x1xf32>
    %c0_15 = arith.constant 0 : index
    %c0_16 = arith.constant 0 : index
    %c0_17 = arith.constant 0 : index
    %26 = vector.load %arg3[%c0_15, %c0_16, %c0_17] : memref<2x8x128xf32, #tpu.memory_space<vmem>>, vector<2x8x128xf32>
    %27 = vector.broadcast %22 : vector<1x8x1xf32> to vector<2x8x128xf32>
    %28 = arith.mulf %26, %27 : vector<2x8x128xf32>
    %29 = vector.broadcast %25 : vector<1x8x1xf32> to vector<2x8x128xf32>
    %30 = arith.addf %28, %29 : vector<2x8x128xf32>
    %c0_18 = arith.constant 0 : index
    %c0_19 = arith.constant 0 : index
    %c0_20 = arith.constant 0 : index
    %31 = vector.load %arg4[%c0_18, %c0_19, %c0_20] : memref<2x8x128xf32, #tpu.memory_space<vmem>>, vector<2x8x128xf32>
    tpu.vector_store %arg4[%c0_18, %c0_19, %c0_20], %30 {strides = array<i32>} : memref<2x8x128xf32, #tpu.memory_space<vmem>>, vector<2x8x128xf32>,
    return
  }
  func.func @transform_0(%arg0: i32) -> (i32, i32, i32) {
    %c0_i32 = arith.constant 0 : i32
    %c0_i32_0 = arith.constant 0 : i32
    %c0_i32_1 = arith.constant 0 : i32
    return %c0_i32, %arg0, %c0_i32_0 : i32, i32, i32
  }
  func.func @transform_1(%arg0: i32) -> (i32, i32, i32) {
    %c0_i32 = arith.constant 0 : i32
    %c0_i32_0 = arith.constant 0 : i32
    %c0_i32_1 = arith.constant 0 : i32
    return %c0_i32, %arg0, %c0_i32_0 : i32, i32, i32
  }
  func.func @transform_2(%arg0: i32) -> (i32, i32, i32) {
    %c0_i32 = arith.constant 0 : i32
    %c0_i32_0 = arith.constant 0 : i32
    %c0_i32_1 = arith.constant 0 : i32
    return %c0_i32, %arg0, %c0_i32_0 : i32, i32, i32
  }
  func.func @transform_3(%arg0: i32) -> (i32, i32, i32) {
    %c0_i32 = arith.constant 0 : i32
    %c0_i32_0 = arith.constant 0 : i32
    %c0_i32_1 = arith.constant 0 : i32
    return %c0_i32, %arg0, %c0_i32_0 : i32, i32, i32
  }
}

</mosaic_0001>

<bundles_post_ra>
// kernel: tpu_custom_call.1
= control target key start
LH: loop header
LB: loop body
LE: loop exit
PB: predicated region body
PF: predicated region fallthrough
CT: control target
= control target key end

     0   :  { %s149_s0 = inlined_call_operand.vmem [shape: f32[1,8,1], index: 0, kind: input, shape index: {}]   ;;  %s150_s1 = inlined_call_operand.vmem [shape: f32[1,8,1], index: 1, kind: input, shape index: {}]   ;;  %s151_s2 = inlined_call_operand.vmem [shape: f32[2,8,128], index: 2, kind: input, shape index: {}]   ;;  %s152_s3 = inlined_call_operand.hbm [shape: f32[2,8,128], index: 3, kind: output, shape index: {}]  }
   0x1   :  { %v15_v0 = vld [vmem:[%s151_s2] sm:$0xff]  ;;  %v16_v1 = vld [vmem:[%s151_s2 + $0x8] sm:$0xff] }
   0x2   :  { %8 = vsyncpa [#allocation3], 0  ;;  %v17_v2 = vadd.f32 %v16_v1, %v15_v0  ;;  %v18_v3 = vmul.f32 %v15_v0, %v15_v0  ;;  %v19_v4 = vmul.f32 %v16_v1, %v16_v1  ;;  %v101_v6 = vmov 0   ;;  %v32_v15 = vld [vmem:[%s149_s0] sm:$0xff]  ;;  %s102_s19 = smov [#allocation2]  }
   0x3   :  { %73 = vset.pattern.permute.xlu1 %v101_v6  ;;  %74 = vset.pattern.permute.xlu0 %v101_v6  ;;  %v33_v18 = vld [vmem:[%s150_s1] sm:$0xff]  ;;  %s58_s20 = sshll.u32 %s102_s19, 4  ;;  %s59_s20 = int_to_ptr.vmem [resolvable:$true] %s58_s20 }
   0x4   :  { %21 = vadd.xlane.f32.xlu0 %v17_v2  ;;  %v20_v5 = vadd.f32 %v19_v4, %v18_v3  ;;  %s77_s0 = scalar_lea.vmem %s59_s20, 256  ;;  %p82_p1 = scmp.lt.s32.totalorder %s59_s20, %s59_s20 }
   0x5   :  { %p78_p0 = scmp.ne.s32.totalorder %s59_s20, %s77_s0  ;;  %p83_p2 = scmp.lt.s32.totalorder %s77_s0, %s77_s0 }
   0x7   :  { %p84_p3 = por %p83_p2, %p82_p1 }
   0x8   :  { %23 = vadd.xlane.f32.xlu0 %v20_v5 }
   0x9   :  { %p85_p4 = pnand %p84_p3, %p78_p0 }
  0x91   :  { %v22_v7 = vpop.xlane.xlu0 %21 }
  0x92   :  { %v25_v8 = vmul.f32 0.00390625, %v22_v7 }
  0x94   :  { %v27_v10 = vmul.f32 %v25_v8, %v25_v8 }
  0x95   :  { %v24_v9 = vpop.xlane.xlu0 %23 }
  0x96   :  { %v26_v11 = vmul.f32 0.00390625, %v24_v9 }
  0x98   :  { %v28_v12 = vsub.f32 %v26_v11, %v27_v10 }
  0x9a   :  { %v29_v13 = vmax.f32 %v28_v12, 0.0 }
  0x9c   :  { %v30_v14 = vadd.f32 1e-05, %v29_v13 }
  0x9e   :  { %75 = vrsqrt.f32 %v30_v14 }
  0xa8   :  { %v76_v16 = vpop.eup %75 }
  0xa9   :  { %v34_v17 = vmul.f32 %v76_v16, %v32_v15 }
  0xab   :  { %39 = vperm.xlu1 %73, %v34_v17   ;;  %v35_v19 = vmul.f32 %v34_v17, %v25_v8 }
  0xad   :  { %v36_v20 = vsub.f32 %v33_v18, %v35_v19 }
  0xaf   :  { %46 = vperm.xlu1 %73, %v36_v20  }
 0x12a   :  { %v40_v21 = vpop.permute.xlu1 %39 }
 0x12b   :  { %v42_v22 = vmul.f32 %v40_v21, %v15_v0  ;;  %v43_v23 = vmul.f32 %v40_v21, %v16_v1 }
 0x12e   :  { %v47_v24 = vpop.permute.xlu1 %46 }
 0x12f   :  { %v49_v25 = vadd.f32 %v47_v24, %v42_v22  ;;  %v50_v26 = vadd.f32 %v47_v24, %v43_v23 }
 0x131   :  { %51 = vst [vmem:[#allocation2] sm:$0xff] %v49_v25  ;;  %52 = vst [vmem:[#allocation2 + $0x8] sm:$0xff] %v50_v26 }
 0x132   :  { %88 = shalt.err (!%p85_p4)
}
 0x133   :  { %s89_s22 = scalar_lea.hbm %s152_s3, 256 }
 0x134   :  { %p90_p5 = scmp.ne.s32.totalorder %s152_s3, %s89_s22  ;;  %p93_p6 = scmp.lt.u32.totalorder %s89_s22, %s152_s3 }
 0x136   :  { %p95_p7 = pnand %p93_p6, %p90_p5 }
 0x138   :  { %98 = shalt.err (!%p95_p7)
}
 0x139   :  { %s103_s27 = smov 128   ;;  %s104_s28 = smov 8  }
 0x13a   :  { %64 = dma.vmem_to_hbm [thread:$0]  %s59_s20, 256, %s152_s3, [#allocation3], %s103_s27, %s103_s27, %s104_s28  }
 0x13b   :  { %99 = dma.done.wait [#allocation3], 256  }
 0x13c   :  { %100 = vsyncadd [#allocation3], 4294967040 }
 0x13d   :  { %68 = vsyncpa [#allocation3], 1 }

</bundles_post_ra>
